<compile_context>
chip_gen: v7x
topology: tpu7x:2x2x1
jax: 0.10.0
libtpu: 0.0.40
codegen_flags: <defaults>
</compile_context>

<pallas_src>
import jax
import jax.numpy as jnp
from jax.experimental import pallas as pl
from jax.experimental.pallas import tpu as pltpu

_INV_SQRT2 = 0.7071067811865476  # hoisted GELU constant (exact erf formulation)


# ----------------------------- Pallas kernel --------------------------------
def _linear_gelu_kernel(x_ref, w_ref, b_ref, o_ref):
    # x_ref: (TM, D) bf16   w_ref: (D, D) bf16   b_ref: (1, D) f32   o_ref: (TM, D)
    x = x_ref[...]
    w = w_ref[...]
    b = b_ref[...]
    # bf16 MXU matmul, f32 accumulation
    y = jnp.dot(x, w, preferred_element_type=jnp.float32) + b
    # exact (erf-based) GELU, matching torch.nn.GELU default
    y = 0.5 * y * (1.0 + jax.lax.erf(y * _INV_SQRT2))
    o_ref[...] = y.astype(o_ref.dtype)


def _round_up(a, m):
    return (a + m - 1) // m * m


def _inner_module_forward(x, w, b, *, tm=256, matmul_dtype=jnp.bfloat16):
    """Forward of the wrapped module (Linear + GELU) via pallas_call.

    x: (B, S, D) activations; w: (D, D); b: (D,).  Requires D % 128 == 0
    (lane-dense last dim).  Rows are padded to a multiple of the row tile.
    """
    B, S, D = x.shape
    assert D % 128 == 0, "hidden dim must be a multiple of 128 for lane-dense tiles"
    M = B * S

    x2 = x.reshape(M, D).astype(matmul_dtype)
    w2 = w.astype(matmul_dtype)
    b2 = b.reshape(1, D).astype(jnp.float32)

    # Row tile: multiple of 8 (f32 sublane) / fits small demos exactly.
    m8 = _round_up(M, 8)
    tm_eff = min(tm, m8)
    m_pad = _round_up(M, tm_eff)
    if m_pad != M:
        x2 = jnp.pad(x2, ((0, m_pad - M), (0, 0)))

    grid = (m_pad // tm_eff,)

    out = pl.pallas_call(
        _linear_gelu_kernel,
        out_shape=jax.ShapeDtypeStruct((m_pad, D), x.dtype),
        grid=grid,
        in_specs=[
            pl.BlockSpec((tm_eff, D), lambda i: (i, 0)),   # activations: tiled rows
            pl.BlockSpec((D, D), lambda i: (0, 0)),        # weight: VMEM-resident
            pl.BlockSpec((1, D), lambda i: (0, 0)),        # bias:   VMEM-resident
        ],
        out_specs=pl.BlockSpec((tm_eff, D), lambda i: (i, 0)),
        compiler_params=pltpu.CompilerParams(
            dimension_semantics=("parallel",),             # megacore sharding on v7x
            vmem_limit_bytes=48 * 1024 * 1024,
        ),
    )(x2, w2, b2)

    if m_pad != M:
        out = out[:M]
    return out.reshape(B, S, D)


# ----------------------------- BaseModel wrapper -----------------------------
class BaseModel:
    """JAX/Pallas mirror of dinov BaseModel: a transparent forward delegator."""

    def __init__(self, opt, module_forward, params):
        self.opt = opt
        self._module_forward = module_forward
        self._params = params

    def forward(self, *inputs, **kwargs):
        # Exactly mirrors: outputs = self.model(*inputs, **kwargs); return outputs
        return self._module_forward(*inputs, **self._params, **kwargs)

    __call__ = forward

    # TODO(synk): from_pretrained (torch.load + align_and_update_state_dicts) is
    # checkpoint file I/O with no Pallas equivalent; parameters are built in-script.


# --------------------------------- main --------------------------------------
if __name__ == "__main__":
    B, S, D = 2, 8, 128  # D is a multiple of 128 (lane-dense last dim)

    key = jax.random.PRNGKey(0)
    kx, kw, kb = jax.random.split(key, 3)
    x = jax.random.normal(kx, (B, S, D), dtype=jnp.float32)
    w = jax.random.normal(kw, (D, D), dtype=jnp.float32) * (1.0 / jnp.sqrt(D))
    b = jax.random.normal(kb, (D,), dtype=jnp.float32) * 0.02

    model = BaseModel(
        opt={},
        module_forward=_inner_module_forward,
        params={"w": w, "b": b},
    )

    out = model(x)
    out = jax.block_until_ready(out)

    # Reference with matching precision (bf16 matmul, f32 accumulation/epilogue)
    xr = x.reshape(-1, D).astype(jnp.bfloat16)
    wr = w.astype(jnp.bfloat16)
    ref = jnp.dot(xr, wr, preferred_element_type=jnp.float32) + b
    ref = 0.5 * ref * (1.0 + jax.lax.erf(ref * _INV_SQRT2))
    ref = ref.reshape(B, S, D).astype(x.dtype)

    assert out.shape == (B, S, D)
    assert jnp.allclose(out, ref, atol=1e-2, rtol=1e-2), "mismatch vs reference"

    print("KERNEL_OK")
</pallas_src>

<mosaic_0001>
module attributes {stable_mosaic.version = 11 : i64} {
  func.func @_linear_gelu_kernel(%arg0: i32, %arg1: memref<16x128xbf16, #tpu.memory_space<vmem>>, %arg2: memref<128x128xbf16, #tpu.memory_space<vmem>>, %arg3: memref<1x128xf32, #tpu.memory_space<vmem>>, %arg4: memref<16x128xf32, #tpu.memory_space<vmem>>) attributes {dimension_semantics = [#tpu.dimension_semantics<parallel>], iteration_bounds = array<i64: 1>, scalar_prefetch = 0 : i64, scratch_operands = 0 : i64, tpu.core_type = #tpu.core_type<tc>, window_params = [{transform_indices = @transform_0, window_bounds = array<i64: 16, 128>}, {pipeline_mode = #tpu.pipeline_mode<synchronous>, transform_indices = @transform_1, window_bounds = array<i64: 128, 128>}, {pipeline_mode = #tpu.pipeline_mode<synchronous>, transform_indices = @transform_2, window_bounds = array<i64: 1, 128>}, {transform_indices = @transform_3, window_bounds = array<i64: 16, 128>}]} {
    %c0 = arith.constant 0 : index
    %c0_0 = arith.constant 0 : index
    %0 = vector.load %arg1[%c0, %c0_0] : memref<16x128xbf16, #tpu.memory_space<vmem>>, vector<16x128xbf16>
    %c0_1 = arith.constant 0 : index
    %c0_2 = arith.constant 0 : index
    %1 = vector.load %arg2[%c0_1, %c0_2] : memref<128x128xbf16, #tpu.memory_space<vmem>>, vector<128x128xbf16>
    %c0_3 = arith.constant 0 : index
    %c0_4 = arith.constant 0 : index
    %2 = vector.load %arg3[%c0_3, %c0_4] : memref<1x128xf32, #tpu.memory_space<vmem>>, vector<1x128xf32>
    %cst = arith.constant dense<0.000000e+00> : vector<16x128xf32>
    %3 = tpu.matmul %0, %1, %cst {dimension_numbers = #tpu.dot_dimension_numbers<[1], [0], [0], [1], [0, 0, 1, 1], [], []>} : vector<16x128xbf16>, vector<128x128xbf16>, vector<16x128xf32> -> vector<16x128xf32>
    %4 = vector.broadcast %2 : vector<1x128xf32> to vector<16x128xf32>
    %5 = arith.addf %3, %4 : vector<16x128xf32>
    %cst_5 = arith.constant 5.000000e-01 : f32
    %6 = vector.broadcast %cst_5 : f32 to vector<16x128xf32>
    %7 = arith.mulf %6, %5 : vector<16x128xf32>
    %cst_6 = arith.constant 0.707106769 : f32
    %8 = vector.broadcast %cst_6 : f32 to vector<16x128xf32>
    %9 = arith.mulf %5, %8 : vector<16x128xf32>
    %10 = math.erf %9 : vector<16x128xf32>
    %cst_7 = arith.constant 1.000000e+00 : f32
    %11 = vector.broadcast %cst_7 : f32 to vector<16x128xf32>
    %12 = arith.addf %11, %10 : vector<16x128xf32>
    %13 = arith.mulf %7, %12 : vector<16x128xf32>
    %c0_8 = arith.constant 0 : index
    %c0_9 = arith.constant 0 : index
    %14 = vector.load %arg4[%c0_8, %c0_9] : memref<16x128xf32, #tpu.memory_space<vmem>>, vector<16x128xf32>
    tpu.vector_store %arg4[%c0_8, %c0_9], %13 {strides = array<i32>} : memref<16x128xf32, #tpu.memory_space<vmem>>, vector<16x128xf32>,
    return
  }
  func.func @transform_0(%arg0: i32) -> (i32, i32) {
    %c0_i32 = arith.constant 0 : i32
    %c0_i32_0 = arith.constant 0 : i32
    return %arg0, %c0_i32 : i32, i32
  }
  func.func @transform_1(%arg0: i32) -> (i32, i32) {
    %c0_i32 = arith.constant 0 : i32
    %c0_i32_0 = arith.constant 0 : i32
    %c0_i32_1 = arith.constant 0 : i32
    return %c0_i32, %c0_i32_0 : i32, i32
  }
  func.func @transform_2(%arg0: i32) -> (i32, i32) {
    %c0_i32 = arith.constant 0 : i32
    %c0_i32_0 = arith.constant 0 : i32
    %c0_i32_1 = arith.constant 0 : i32
    return %c0_i32, %c0_i32_0 : i32, i32
  }
  func.func @transform_3(%arg0: i32) -> (i32, i32) {
    %c0_i32 = arith.constant 0 : i32
    %c0_i32_0 = arith.constant 0 : i32
    return %arg0, %c0_i32 : i32, i32
  }
}

</mosaic_0001>

<bundles_post_ra>
// kernel: tpu_custom_call.1
= control target key start
LH: loop header
LB: loop body
LE: loop exit
PB: predicated region body
PF: predicated region fallthrough
CT: control target
= control target key end

     0   :  { %8 = vsyncpa [#allocation3], 0  ;;  %s395_s0 = inlined_call_operand.hbm [shape: bf16[16,128], index: 0, kind: input, shape index: {}]   ;;  %s396_s1 = inlined_call_operand.hbm [shape: bf16[128,128], index: 1, kind: input, shape index: {}]   ;;  %s397_s2 = inlined_call_operand.vmem [shape: f32[1,128], index: 2, kind: input, shape index: {}]   ;;  %s398_s3 = inlined_call_operand.hbm [shape: f32[16,128], index: 3, kind: output, shape index: {}]  }
   0x1   :  { %9 = vsyncpa [#allocation6], 0 }
   0x2   :  { %10 = vsyncpa [#allocation4], 0  ;;  %s327_s12 = smov [#allocation2]   ;;  %s255_s16 = scalar_lea.hbm %s395_s0, 128 }
   0x3   :  { %s16_s13 = sshll.u32 %s327_s12, 4  ;;  %p256_p0 = scmp.ne.s32.totalorder %s395_s0, %s255_s16  ;;  %s17_s13 = int_to_ptr.vmem [resolvable:$true] %s16_s13 }
   0x4   :  { %p259_p1 = scmp.lt.u32.totalorder %s255_s16, %s395_s0 }
   0x6   :  { %p261_p2 = pnand %p259_p1, %p256_p0 }
   0x8   :  { %264 = shalt.err (!%p261_p2)
}
   0x9   :  { %s265_s21 = scalar_lea.vmem %s17_s13, 128  ;;  %p270_p4 = scmp.lt.s32.totalorder %s17_s13, %s17_s13 }
   0xa   :  { %p266_p3 = scmp.ne.s32.totalorder %s17_s13, %s265_s21  ;;  %p271_p5 = scmp.lt.s32.totalorder %s265_s21, %s265_s21 }
   0xc   :  { %p272_p6 = por %p271_p5, %p270_p4 }
   0xe   :  { %p273_p7 = pnand %p272_p6, %p266_p3 }
  0x10   :  { %276 = shalt.err (!%p273_p7)
}
  0x11   :  { %s328_s22 = smov 64   ;;  %s329_s23 = smov 4  }
  0x12   :  { %22 = dma.hbm_to_vmem [thread:$0]  %s395_s0, 128, %s17_s13, [#allocation3], %s328_s22, %s328_s22, %s329_s23  }
  0x13   :  { %s330_s26 = smov [#allocation5]   ;;  %s277_s30 = scalar_lea.hbm %s396_s1, 1024 }
  0x14   :  { %s28_s27 = sshll.u32 %s330_s26, 4  ;;  %p278_p8 = scmp.ne.s32.totalorder %s396_s1, %s277_s30  ;;  %s29_s27 = int_to_ptr.vmem [resolvable:$true] %s28_s27 }
  0x15   :  { %p281_p9 = scmp.lt.u32.totalorder %s277_s30, %s396_s1 }
  0x17   :  { %p283_p10 = pnand %p281_p9, %p278_p8 }
  0x19   :  { %286 = shalt.err (!%p283_p10)
}
  0x1a   :  { %s287_s8 = scalar_lea.vmem %s29_s27, 1024  ;;  %p292_p12 = scmp.lt.s32.totalorder %s29_s27, %s29_s27 }
  0x1b   :  { %p288_p11 = scmp.ne.s32.totalorder %s29_s27, %s287_s8  ;;  %p293_p13 = scmp.lt.s32.totalorder %s287_s8, %s287_s8 }
  0x1d   :  { %p294_p0 = por %p293_p13, %p292_p12 }
  0x1f   :  { %p295_p1 = pnand %p294_p0, %p288_p11 }
  0x21   :  { %298 = shalt.err (!%p295_p1)
}
  0x22   :  { %34 = dma.hbm_to_vmem [thread:$0]  %s396_s1, 1024, %s29_s27, [#allocation6], %s328_s22, %s328_s22, %s329_s23  }
  0x23   :  { %321 = dma.done.wait [#allocation3], 128  }
  0x24   :  { %322 = vsyncadd [#allocation3], 4294967168 }
  0x25   :  { %323 = dma.done.wait [#allocation6], 1024  }
  0x26   :  { %324 = vsyncadd [#allocation6], 4294966272  ;;  %v331_v0 = vmov 0.0   ;;  %vm332_vm0 = vmmov 0   ;;  %v242_v1 = vld [vmem:[#allocation5] sm:$0xff]   ;;  %v243_v2 = vld [vmem:[#allocation5 + $0x8] sm:$0xff]  }
  0x27   :  { %213 = vmatprep.subr.bf16.mxu0 %v331_v0  ;;  %229 = vmatprep.mubr.msk.bf16.mxu0 %vm332_vm0, %v331_v0  ;;  %v244_v3 = vld [vmem:[#allocation5 + $0x10] sm:$0xff]   ;;  %v245_v4 = vld [vmem:[#allocation5 + $0x18] sm:$0xff]   ;;  %v246_v5 = vld [vmem:[#allocation5 + $0x20] sm:$0xff]   ;;  %s333_s11 = smov [#allocation7]  }
  0x28   :  { %214 = vmatpush3.bf16.msra.mxu0 %v242_v1  ;;  %v247_v6 = vld [vmem:[#allocation5 + $0x28] sm:$0xff]   ;;  %v248_v7 = vld [vmem:[#allocation5 + $0x30] sm:$0xff]   ;;  %v249_v8 = vld [vmem:[#allocation5 + $0x38] sm:$0xff]   ;;  %s181_s12 = sshll.u32 %s333_s11, 4  ;;  %s182_s12 = int_to_ptr.vmem [resolvable:$true] %s181_s12 }
  0x29   :  { %215 = vmatprep.subr.bf16.mxu0 %v331_v0  ;;  %v250_v9 = vld [vmem:[#allocation2] sm:$0xff]   ;;  %p304_p3 = scmp.lt.s32.totalorder %s182_s12, %s182_s12 }
  0x2a   :  { %v194_v10 = vld [vmem:[%s397_s2] ss:$0 sm:$0xff]  ;;  %s299_s2 = scalar_lea.vmem %s182_s12, 256 }
  0x2b   :  { %p300_p2 = scmp.ne.s32.totalorder %s182_s12, %s299_s2  ;;  %p305_p4 = scmp.lt.s32.totalorder %s299_s2, %s299_s2 }
  0x2c   :  { %216 = vmatpush3.bf16.msra.mxu0 %v243_v2 }
  0x2d   :  { %217 = vmatprep.subr.bf16.mxu0 %v331_v0  ;;  %p306_p5 = por %p305_p4, %p304_p3 }
  0x2f   :  { %p307_p6 = pnand %p306_p5, %p300_p2 }
  0x30   :  { %218 = vmatpush3.bf16.msra.mxu0 %v244_v3 }
  0x31   :  { %219 = vmatprep.subr.bf16.mxu0 %v331_v0 }
  0x34   :  { %220 = vmatpush3.bf16.msra.mxu0 %v245_v4 }
  0x35   :  { %221 = vmatprep.subr.bf16.mxu0 %v331_v0 }
  0x38   :  { %222 = vmatpush3.bf16.msra.mxu0 %v246_v5 }
  0x39   :  { %223 = vmatprep.subr.bf16.mxu0 %v331_v0 }
  0x3c   :  { %224 = vmatpush3.bf16.msra.mxu0 %v247_v6 }
  0x3d   :  { %225 = vmatprep.subr.bf16.mxu0 %v331_v0 }
  0x40   :  { %226 = vmatpush3.bf16.msra.mxu0 %v248_v7 }
  0x41   :  { %227 = vmatprep.subr.bf16.mxu0 %v331_v0 }
  0x44   :  { %228 = vmatpush3.bf16.msra.mxu0 %v249_v8 }
  0x47   :  { %230 = vmatmul.mubr.bf16.vlgmr.msra.gmra.mrb[0].mxu0 %v250_v9 }
 0x11a   :  { %v157_v11 = vpop.f32.mrb[0].mxu0 }
 0x11b   :  { %v158_v12 = vadd.f32 %v194_v10, %v157_v11  ;;  %v231_v13 = vpop.f32.mrb[1].mxu0 }
 0x11c   :  { %v160_v14 = vpop.f32.mrb[2].mxu0 }
 0x11d   :  { %v166_v15 = vmul.f32 0.70710677, %v158_v12  ;;  %v161_v16 = vadd.f32 %v194_v10, %v160_v14  ;;  %v232_v17 = vpop.f32.mrb[3].mxu0  ;;  %v164_v20 = vmul.f32 0.5, %v158_v12 }
 0x11f   :  { %251 = verf.f32 %v166_v15  ;;  %v167_v18 = vmul.f32 0.70710677, %v161_v16  ;;  %v165_v24 = vmul.f32 0.5, %v161_v16 }
 0x121   :  { %253 = verf.f32 %v167_v18 }
 0x129   :  { %v252_v19 = vpop.eup %251 }
 0x12a   :  { %v170_v21 = vadd.f32 1.0, %v252_v19 }
 0x12b   :  { %v254_v22 = vpop.eup %253 }
 0x12c   :  { %v172_v23 = vmul.f32 %v170_v21, %v164_v20  ;;  %v171_v25 = vadd.f32 1.0, %v254_v22 }
 0x12e   :  { %174 = vst [vmem:[#allocation7] sm:$0xff] %v172_v23  ;;  %v173_v26 = vmul.f32 %v171_v25, %v165_v24 }
 0x130   :  { %175 = vst [vmem:[#allocation7 + $0x8] sm:$0xff] %v173_v26 }
 0x131   :  { %310 = shalt.err (!%p307_p6)
}
 0x132   :  { %s311_s15 = scalar_lea.hbm %s398_s3, 256 }
 0x133   :  { %p312_p7 = scmp.ne.s32.totalorder %s398_s3, %s311_s15  ;;  %p315_p8 = scmp.lt.u32.totalorder %s311_s15, %s398_s3 }
 0x135   :  { %p317_p9 = pnand %p315_p8, %p312_p7 }
 0x137   :  { %320 = shalt.err (!%p317_p9)
}
 0x138   :  { %s334_s20 = smov 128   ;;  %s335_s21 = smov 8  }
 0x139   :  { %187 = dma.vmem_to_hbm [thread:$0]  %s182_s12, 256, %s398_s3, [#allocation4], %s334_s20, %s334_s20, %s335_s21  }
 0x13a   :  { %325 = dma.done.wait [#allocation4], 256  }
 0x13b   :  { %326 = vsyncadd [#allocation4], 4294967040 }
 0x13c   :  { %191 = vsyncpa [#allocation3], 1 }
 0x13d   :  { %192 = vsyncpa [#allocation6], 1 }
 0x13e   :  { %193 = vsyncpa [#allocation4], 1 }

</bundles_post_ra>
